<compile_context>
chip_gen: v5e
topology: v5e:2x2
jax: 0.10.0
libtpu: 0.0.40
codegen_flags: <defaults>
</compile_context>

<pallas_src>
import jax
import jax.numpy as jnp
import numpy as np
from jax.experimental import pallas as pl
from jax.experimental.pallas import tpu as pltpu


def _cdiv(a, b):
    return -(-a // b)


def naf_tree_kernel(xT_ref, lT_ref, lyT_ref, w1T_ref, b1_ref, m_ref, v_ref,
                    out_ref):
    # Shapes (tn = sample tile on lanes):
    #   xT_ref  : (F, tn)                 lT_ref : (F, T*tn)   (leaf t = lane
    #   lyT_ref : (T*Yd, tn)                                    slice t*tn:(t+1)*tn)
    #   w1T_ref : (H, F)   b1_ref : (H, 1)
    #   m_ref   : (H, H) = W2 W2^T        v_ref  : (H, 1) = W2 b2^T
    #   out_ref : (T+F+Yd, tn)  rows = [betas(T) | xs(F) | y(Yd)]
    F, tn = xT_ref.shape
    T = lT_ref.shape[1] // tn
    Yd = lyT_ref.shape[0] // T

    W1T = w1T_ref[...]
    b1 = b1_ref[...]
    M = m_ref[...]
    v = v_ref[...]

    # Query path: q^T = (W2 W2^T) tanh(W1^T X^T + b1) + W2 b2^T   -> (H, tn)
    hx = jnp.tanh(jnp.dot(W1T, xT_ref[...],
                          preferred_element_type=jnp.float32) + b1)
    qT = jnp.dot(M, hx, preferred_element_type=jnp.float32) + v

    # Leaf path: ALL leaf encodings with one MXU matmul + one tanh stream.
    # (Only tanh(W1^T L^T + b1) is needed; W2/b2 were folded into qT and the
    # remaining per-sample constant cancels inside the softmax.)
    lT = lT_ref[...]                                               # (F, T*tn)
    hl = jnp.tanh(jnp.dot(W1T, lT,
                          preferred_element_type=jnp.float32) + b1)  # (H, T*tn)

    # dots (T, tn): per-leaf slices of hl are static, 128-aligned lane views.
    d_rows = [jnp.sum(qT * hl[:, t * tn:(t + 1) * tn], axis=0, keepdims=True)
              for t in range(T)]
    dots = jnp.concatenate(d_rows, axis=0)                         # (T, tn)

    # Dense, max-stabilized softmax over the (sublane) leaf axis.
    mx = jnp.max(dots, axis=0, keepdims=True)                      # (1, tn)
    e = jnp.exp(dots - mx)                                         # one EUP stream
    denom = jnp.sum(e, axis=0, keepdims=True)
    # approx=False kept deliberately: approx reciprocal is marginal vs the
    # 1e-4/1e-5 validation tolerances, and VPU has ample slack here.
    betas = e * pl.reciprocal(denom, approx=False)                 # (T, tn)

    # Attention-weighted reductions over the (small, static) leaf axis.
    y_acc = betas[0:1, :] * lyT_ref[0:Yd, :]                       # (Yd, tn)
    xs_acc = betas[0:1, :] * lT[:, 0:tn]                           # (F, tn)
    for t in range(1, T):
        b_t = betas[t:t + 1, :]                                    # (1, tn)
        y_acc = y_acc + b_t * lyT_ref[t * Yd:(t + 1) * Yd, :]
        xs_acc = xs_acc + b_t * lT[:, t * tn:(t + 1) * tn]

    # One packed, lane-dense store.
    out_ref[0:T, :] = betas
    out_ref[T:T + F, :] = xs_acc
    out_ref[T + F:T + F + Yd, :] = y_acc


def _choose_tile(N, tile_n):
    """Large lane-dense tiles, but always >=2 grid steps (v7x megacore) and
    minimal padding waste."""
    tile_req = max(128, (int(tile_n) // 128) * 128)
    n128 = _cdiv(N, 128) * 128
    n_blocks = max(2, _cdiv(n128, tile_req))
    tile = _cdiv(_cdiv(N, n_blocks), 128) * 128
    return tile, n_blocks, n_blocks * tile


def naf_tree_forward(X, first_leaf_xs, first_leaf_y, first_alphas, params,
                     need_attention_weights=False, tile_n=8192):
    N, F = X.shape
    _, T, _ = first_leaf_xs.shape
    Yd = first_leaf_y.shape[2]
    W1, b1, W2, b2 = params
    H = W1.shape[1]
    # The W2-fold below is only valid for the 2-layer encoder
    # Linear(F,H) -> Tanh -> Linear(H,H) (make_encoder(..., n_layers=2)).
    assert W1.shape == (F, H) and W2.shape == (H, H), "expects 2-layer encoder"

    tile, n_blocks, n_pad = _choose_tile(N, tile_n)
    f32 = jnp.float32

    def pad_n(a):
        return jnp.pad(a, [(0, n_pad - N)] + [(0, 0)] * (a.ndim - 1))

    Xp = pad_n(X.astype(f32))                                      # (n_pad, F)
    Lp = pad_n(first_leaf_xs.astype(f32))                          # (n_pad, T, F)
    Lyp = pad_n(first_leaf_y.astype(f32))                          # (n_pad, T, Yd)

    # Layout plumbing (one fused XLA pass per tensor):
    #   keys          -> (F, n_pad)
    #   leaf features -> (n_blocks, F, T*tile)   [enables the fused leaf matmul]
    #   leaf targets  -> (T*Yd, n_pad)           [sublane-dense, no 4->8 pad]
    xT = Xp.T
    lT = (jnp.transpose(Lp, (2, 1, 0))          # (F, T, n_pad)
          .reshape(F, T, n_blocks, tile)
          .transpose(2, 0, 1, 3)                # (n_blocks, F, T, tile)
          .reshape(n_blocks, F, T * tile))
    lyT = jnp.transpose(Lyp, (1, 2, 0)).reshape(T * Yd, n_pad)

    # Fold the second encoder layer into the query side (tiny, done once).
    w1T = W1.T.astype(f32)                                         # (H, F)
    b1c = jnp.asarray(b1, f32).reshape(H, 1)                       # (H, 1)
    m_w = (W2 @ W2.T).astype(f32)                                  # (H, H)
    v_w = (W2 @ jnp.asarray(b2, f32).reshape(H, 1)).astype(f32)    # (H, 1)

    R = T + F + Yd   # packed output rows: [betas | xs | y]

    out = pl.pallas_call(
        naf_tree_kernel,
        out_shape=jax.ShapeDtypeStruct((R, n_pad), f32),
        grid_spec=pltpu.PrefetchScalarGridSpec(
            num_scalar_prefetch=0,
            grid=(n_blocks,),
            in_specs=[
                pl.BlockSpec((F, tile), lambda i: (0, i)),
                pl.BlockSpec((None, F, T * tile), lambda i: (i, 0, 0)),
                pl.BlockSpec((T * Yd, tile), lambda i: (0, i)),
                pl.BlockSpec((H, F), lambda i: (0, 0)),
                pl.BlockSpec((H, 1), lambda i: (0, 0)),
                pl.BlockSpec((H, H), lambda i: (0, 0)),
                pl.BlockSpec((H, 1), lambda i: (0, 0)),
            ],
            out_specs=pl.BlockSpec((R, tile), lambda i: (0, i)),
        ),
        compiler_params=pltpu.CompilerParams(
            dimension_semantics=("parallel",),
            # Explicit 32 MiB: v5e default scoped VMEM is only 16 MiB; 32 MiB
            # is safe on v5e/v6e and within v7x's 64 MiB physical VMEM.
            vmem_limit_bytes=32 * 1024 * 1024,
        ),
    )(xT, lT, lyT, w1T, b1c, m_w, v_w)

    outN = out.T[:N]                                               # (N, R)
    second_y = outN[:, T + F:]
    if need_attention_weights:
        second_xs = outN[:, T:T + F]
        betas = outN[:, :T]
        return second_y, second_xs, first_alphas, betas
    return second_y


def reference_forward(X, leaf_xs, leaf_y, params):
    """Pure-JAX reference mirroring the PyTorch forward (unfused encoder)."""
    W1, b1, W2, b2 = params

    def enc(v):
        return jnp.tanh(v @ W1 + b1) @ W2 + b2

    x_enc = enc(X)
    N, T, F = leaf_xs.shape
    l_enc = enc(leaf_xs.reshape(-1, F)).reshape(N, T, -1)
    dots = jnp.einsum('nf,ntf->nt', x_enc, l_enc)
    betas = jax.nn.softmax(dots, axis=1)
    second_y = jnp.einsum('nty,nt->ny', leaf_y, betas)
    second_xs = jnp.einsum('ntf,nt->nf', leaf_xs, betas)
    return second_y, second_xs, betas


if __name__ == "__main__":
    # Small shapes: N non-multiple of 128 to exercise padding and the
    # >=2-grid-step tile cap; F features, T leaves, Yd targets, H hidden.
    N, F, T, Yd, H = 200, 8, 8, 4, 16

    key = jax.random.PRNGKey(0)
    k1, k2, k3, k4, k5, k6, k7, k8 = jax.random.split(key, 8)

    X = jax.random.normal(k1, (N, F), dtype=jnp.float32)
    first_leaf_xs = jax.random.normal(k2, (N, T, F), dtype=jnp.float32)
    first_leaf_y = jax.random.normal(k3, (N, T, Yd), dtype=jnp.float32)
    first_alphas = jax.random.uniform(k4, (N, T), dtype=jnp.float32)

    # Deterministic encoder parameters (Linear(F,H) -> Tanh -> Linear(H,H)).
    bound1 = 1.0 / np.sqrt(F)
    bound2 = 1.0 / np.sqrt(H)
    W1 = jax.random.uniform(k5, (F, H), minval=-bound1, maxval=bound1,
                            dtype=jnp.float32)
    b1 = jax.random.uniform(k6, (1, H), minval=-bound1, maxval=bound1,
                            dtype=jnp.float32)
    W2 = jax.random.uniform(k7, (H, H), minval=-bound2, maxval=bound2,
                            dtype=jnp.float32)
    b2 = jax.random.uniform(k8, (1, H), minval=-bound2, maxval=bound2,
                            dtype=jnp.float32)
    params = (W1, b1, W2, b2)

    second_y, second_xs, alphas_out, betas = naf_tree_forward(
        X, first_leaf_xs, first_leaf_y, first_alphas, params,
        need_attention_weights=True)
    jax.block_until_ready((second_y, second_xs, alphas_out, betas))

    ref_y, ref_xs, ref_betas = reference_forward(
        X, first_leaf_xs, first_leaf_y, params)

    np.testing.assert_allclose(np.asarray(second_y), np.asarray(ref_y),
                               rtol=1e-4, atol=1e-5)
    np.testing.assert_allclose(np.asarray(second_xs), np.asarray(ref_xs),
                               rtol=1e-4, atol=1e-5)
    np.testing.assert_allclose(np.asarray(betas), np.asarray(ref_betas),
                               rtol=1e-4, atol=1e-5)
    np.testing.assert_allclose(np.asarray(alphas_out),
                               np.asarray(first_alphas), rtol=0, atol=0)

    print("KERNEL_OK")
</pallas_src>

<mosaic_0001>
module attributes {stable_mosaic.version = 11 : i64} {
  func.func @naf_tree_kernel(%arg0: i32, %arg1: memref<8x128xf32, #tpu.memory_space<vmem>>, %arg2: memref<1x8x1024xf32, #tpu.memory_space<vmem>>, %arg3: memref<32x128xf32, #tpu.memory_space<vmem>>, %arg4: memref<16x8xf32, #tpu.memory_space<vmem>>, %arg5: memref<16x1xf32, #tpu.memory_space<vmem>>, %arg6: memref<16x16xf32, #tpu.memory_space<vmem>>, %arg7: memref<16x1xf32, #tpu.memory_space<vmem>>, %arg8: memref<20x128xf32, #tpu.memory_space<vmem>>) attributes {dimension_semantics = [#tpu.dimension_semantics<parallel>], iteration_bounds = array<i64: 2>, scalar_prefetch = 0 : i64, scratch_operands = 0 : i64, tpu.core_type = #tpu.core_type<tc>, window_params = [{transform_indices = @transform_0, window_bounds = array<i64: 8, 128>}, {transform_indices = @transform_1, window_bounds = array<i64: 1, 8, 1024>}, {transform_indices = @transform_2, window_bounds = array<i64: 32, 128>}, {pipeline_mode = #tpu.pipeline_mode<synchronous>, transform_indices = @transform_3, window_bounds = array<i64: 16, 8>}, {pipeline_mode = #tpu.pipeline_mode<synchronous>, transform_indices = @transform_4, window_bounds = array<i64: 16, 1>}, {pipeline_mode = #tpu.pipeline_mode<synchronous>, transform_indices = @transform_5, window_bounds = array<i64: 16, 16>}, {pipeline_mode = #tpu.pipeline_mode<synchronous>, transform_indices = @transform_6, window_bounds = array<i64: 16, 1>}, {transform_indices = @transform_7, window_bounds = array<i64: 20, 128>}]} {
    %c0 = arith.constant 0 : index
    %c0_0 = arith.constant 0 : index
    %0 = vector.load %arg4[%c0, %c0_0] : memref<16x8xf32, #tpu.memory_space<vmem>>, vector<16x8xf32>
    %c0_1 = arith.constant 0 : index
    %c0_2 = arith.constant 0 : index
    %1 = vector.load %arg5[%c0_1, %c0_2] : memref<16x1xf32, #tpu.memory_space<vmem>>, vector<16x1xf32>
    %c0_3 = arith.constant 0 : index
    %c0_4 = arith.constant 0 : index
    %2 = vector.load %arg6[%c0_3, %c0_4] : memref<16x16xf32, #tpu.memory_space<vmem>>, vector<16x16xf32>
    %c0_5 = arith.constant 0 : index
    %c0_6 = arith.constant 0 : index
    %3 = vector.load %arg7[%c0_5, %c0_6] : memref<16x1xf32, #tpu.memory_space<vmem>>, vector<16x1xf32>
    %c0_7 = arith.constant 0 : index
    %c0_8 = arith.constant 0 : index
    %4 = vector.load %arg1[%c0_7, %c0_8] : memref<8x128xf32, #tpu.memory_space<vmem>>, vector<8x128xf32>
    %cst = arith.constant dense<0.000000e+00> : vector<16x128xf32>
    %5 = tpu.matmul %0, %4, %cst {dimension_numbers = #tpu.dot_dimension_numbers<[1], [0], [0], [1], [0, 0, 1, 1], [], []>} : vector<16x8xf32>, vector<8x128xf32>, vector<16x128xf32> -> vector<16x128xf32>
    %6 = vector.broadcast %1 : vector<16x1xf32> to vector<16x128xf32>
    %7 = arith.addf %5, %6 : vector<16x128xf32>
    %8 = math.tanh %7 : vector<16x128xf32>
    %cst_9 = arith.constant dense<0.000000e+00> : vector<16x128xf32>
    %9 = tpu.matmul %2, %8, %cst_9 {dimension_numbers = #tpu.dot_dimension_numbers<[1], [0], [0], [1], [0, 0, 1, 1], [], []>} : vector<16x16xf32>, vector<16x128xf32>, vector<16x128xf32> -> vector<16x128xf32>
    %10 = vector.broadcast %3 : vector<16x1xf32> to vector<16x128xf32>
    %11 = arith.addf %9, %10 : vector<16x128xf32>
    %c0_10 = arith.constant 0 : index
    %c0_11 = arith.constant 0 : index
    %c0_12 = arith.constant 0 : index
    %12 = vector.load %arg2[%c0_10, %c0_11, %c0_12] : memref<1x8x1024xf32, #tpu.memory_space<vmem>>, vector<1x8x1024xf32>
    %13 = vector.shape_cast %12 : vector<1x8x1024xf32> to vector<8x1024xf32>
    %cst_13 = arith.constant dense<0.000000e+00> : vector<16x1024xf32>
    %14 = tpu.matmul %0, %13, %cst_13 {dimension_numbers = #tpu.dot_dimension_numbers<[1], [0], [0], [1], [0, 0, 1, 1], [], []>} : vector<16x8xf32>, vector<8x1024xf32>, vector<16x1024xf32> -> vector<16x1024xf32>
    %15 = vector.broadcast %1 : vector<16x1xf32> to vector<16x1024xf32>
    %16 = arith.addf %14, %15 : vector<16x1024xf32>
    %17 = math.tanh %16 : vector<16x1024xf32>
    %18 = vector.extract_strided_slice %17 {offsets = [0, 0], sizes = [16, 128], strides = [1, 1]} : vector<16x1024xf32> to vector<16x128xf32>
    %19 = arith.mulf %11, %18 : vector<16x128xf32>
    %cst_14 = arith.constant dense<0.000000e+00> : vector<128xf32>
    %20 = vector.multi_reduction <add>, %19, %cst_14 [0] : vector<16x128xf32> to vector<128xf32>
    %21 = vector.shape_cast %20 : vector<128xf32> to vector<1x128xf32>
    %22 = vector.extract_strided_slice %17 {offsets = [0, 128], sizes = [16, 128], strides = [1, 1]} : vector<16x1024xf32> to vector<16x128xf32>
    %23 = arith.mulf %11, %22 : vector<16x128xf32>
    %cst_15 = arith.constant dense<0.000000e+00> : vector<128xf32>
    %24 = vector.multi_reduction <add>, %23, %cst_15 [0] : vector<16x128xf32> to vector<128xf32>
    %25 = vector.shape_cast %24 : vector<128xf32> to vector<1x128xf32>
    %26 = vector.extract_strided_slice %17 {offsets = [0, 256], sizes = [16, 128], strides = [1, 1]} : vector<16x1024xf32> to vector<16x128xf32>
    %27 = arith.mulf %11, %26 : vector<16x128xf32>
    %cst_16 = arith.constant dense<0.000000e+00> : vector<128xf32>
    %28 = vector.multi_reduction <add>, %27, %cst_16 [0] : vector<16x128xf32> to vector<128xf32>
    %29 = vector.shape_cast %28 : vector<128xf32> to vector<1x128xf32>
    %30 = vector.extract_strided_slice %17 {offsets = [0, 384], sizes = [16, 128], strides = [1, 1]} : vector<16x1024xf32> to vector<16x128xf32>
    %31 = arith.mulf %11, %30 : vector<16x128xf32>
    %cst_17 = arith.constant dense<0.000000e+00> : vector<128xf32>
    %32 = vector.multi_reduction <add>, %31, %cst_17 [0] : vector<16x128xf32> to vector<128xf32>
    %33 = vector.shape_cast %32 : vector<128xf32> to vector<1x128xf32>
    %34 = vector.extract_strided_slice %17 {offsets = [0, 512], sizes = [16, 128], strides = [1, 1]} : vector<16x1024xf32> to vector<16x128xf32>
    %35 = arith.mulf %11, %34 : vector<16x128xf32>
    %cst_18 = arith.constant dense<0.000000e+00> : vector<128xf32>
    %36 = vector.multi_reduction <add>, %35, %cst_18 [0] : vector<16x128xf32> to vector<128xf32>
    %37 = vector.shape_cast %36 : vector<128xf32> to vector<1x128xf32>
    %38 = vector.extract_strided_slice %17 {offsets = [0, 640], sizes = [16, 128], strides = [1, 1]} : vector<16x1024xf32> to vector<16x128xf32>
    %39 = arith.mulf %11, %38 : vector<16x128xf32>
    %cst_19 = arith.constant dense<0.000000e+00> : vector<128xf32>
    %40 = vector.multi_reduction <add>, %39, %cst_19 [0] : vector<16x128xf32> to vector<128xf32>
    %41 = vector.shape_cast %40 : vector<128xf32> to vector<1x128xf32>
    %42 = vector.extract_strided_slice %17 {offsets = [0, 768], sizes = [16, 128], strides = [1, 1]} : vector<16x1024xf32> to vector<16x128xf32>
    %43 = arith.mulf %11, %42 : vector<16x128xf32>
    %cst_20 = arith.constant dense<0.000000e+00> : vector<128xf32>
    %44 = vector.multi_reduction <add>, %43, %cst_20 [0] : vector<16x128xf32> to vector<128xf32>
    %45 = vector.shape_cast %44 : vector<128xf32> to vector<1x128xf32>
    %46 = vector.extract_strided_slice %17 {offsets = [0, 896], sizes = [16, 128], strides = [1, 1]} : vector<16x1024xf32> to vector<16x128xf32>
    %47 = arith.mulf %11, %46 : vector<16x128xf32>
    %cst_21 = arith.constant dense<0.000000e+00> : vector<128xf32>
    %48 = vector.multi_reduction <add>, %47, %cst_21 [0] : vector<16x128xf32> to vector<128xf32>
    %49 = vector.shape_cast %48 : vector<128xf32> to vector<1x128xf32>
    %50 = tpu.concatenate %21, %25, %29, %33, %37, %41, %45, %49 in 0 : vector<1x128xf32>, vector<1x128xf32>, vector<1x128xf32>, vector<1x128xf32>, vector<1x128xf32>, vector<1x128xf32>, vector<1x128xf32>, vector<1x128xf32> -> vector<8x128xf32>
    %cst_22 = arith.constant dense<0xFF800000> : vector<128xf32>
    %51 = vector.multi_reduction <maximumf>, %50, %cst_22 [0] : vector<8x128xf32> to vector<128xf32>
    %52 = vector.shape_cast %51 : vector<128xf32> to vector<1x128xf32>
    %53 = vector.broadcast %52 : vector<1x128xf32> to vector<8x128xf32>
    %54 = arith.subf %50, %53 : vector<8x128xf32>
    %55 = math.exp %54 : vector<8x128xf32>
    %cst_23 = arith.constant dense<0.000000e+00> : vector<128xf32>
    %56 = vector.multi_reduction <add>, %55, %cst_23 [0] : vector<8x128xf32> to vector<128xf32>
    %57 = vector.shape_cast %56 : vector<128xf32> to vector<1x128xf32>
    %58 = tpu.reciprocal %57 : vector<1x128xf32> -> vector<1x128xf32>
    %59 = vector.broadcast %58 : vector<1x128xf32> to vector<8x128xf32>
    %60 = arith.mulf %55, %59 : vector<8x128xf32>
    %61 = vector.extract_strided_slice %60 {offsets = [0, 0], sizes = [1, 128], strides = [1, 1]} : vector<8x128xf32> to vector<1x128xf32>
    %c0_24 = arith.constant 0 : index
    %c0_25 = arith.constant 0 : index
    %62 = vector.load %arg3[%c0_24, %c0_25] : memref<32x128xf32, #tpu.memory_space<vmem>>, vector<4x128xf32>
    %63 = vector.broadcast %61 : vector<1x128xf32> to vector<4x128xf32>
    %64 = arith.mulf %63, %62 : vector<4x128xf32>
    %65 = vector.extract_strided_slice %60 {offsets = [0, 0], sizes = [1, 128], strides = [1, 1]} : vector<8x128xf32> to vector<1x128xf32>
    %66 = vector.extract_strided_slice %13 {offsets = [0, 0], sizes = [8, 128], strides = [1, 1]} : vector<8x1024xf32> to vector<8x128xf32>
    %67 = vector.broadcast %65 : vector<1x128xf32> to vector<8x128xf32>
    %68 = arith.mulf %67, %66 : vector<8x128xf32>
    %69 = vector.extract_strided_slice %60 {offsets = [1, 0], sizes = [1, 128], strides = [1, 1]} : vector<8x128xf32> to vector<1x128xf32>
    %c4 = arith.constant 4 : index
    %c0_26 = arith.constant 0 : index
    %70 = vector.load %arg3[%c4, %c0_26] : memref<32x128xf32, #tpu.memory_space<vmem>>, vector<4x128xf32>
    %71 = vector.broadcast %69 : vector<1x128xf32> to vector<4x128xf32>
    %72 = arith.mulf %71, %70 : vector<4x128xf32>
    %73 = arith.addf %64, %72 : vector<4x128xf32>
    %74 = vector.extract_strided_slice %13 {offsets = [0, 128], sizes = [8, 128], strides = [1, 1]} : vector<8x1024xf32> to vector<8x128xf32>
    %75 = vector.broadcast %69 : vector<1x128xf32> to vector<8x128xf32>
    %76 = arith.mulf %75, %74 : vector<8x128xf32>
    %77 = arith.addf %68, %76 : vector<8x128xf32>
    %78 = vector.extract_strided_slice %60 {offsets = [2, 0], sizes = [1, 128], strides = [1, 1]} : vector<8x128xf32> to vector<1x128xf32>
    %c8 = arith.constant 8 : index
    %c0_27 = arith.constant 0 : index
    %79 = vector.load %arg3[%c8, %c0_27] : memref<32x128xf32, #tpu.memory_space<vmem>>, vector<4x128xf32>
    %80 = vector.broadcast %78 : vector<1x128xf32> to vector<4x128xf32>
    %81 = arith.mulf %80, %79 : vector<4x128xf32>
    %82 = arith.addf %73, %81 : vector<4x128xf32>
    %83 = vector.extract_strided_slice %13 {offsets = [0, 256], sizes = [8, 128], strides = [1, 1]} : vector<8x1024xf32> to vector<8x128xf32>
    %84 = vector.broadcast %78 : vector<1x128xf32> to vector<8x128xf32>
    %85 = arith.mulf %84, %83 : vector<8x128xf32>
    %86 = arith.addf %77, %85 : vector<8x128xf32>
    %87 = vector.extract_strided_slice %60 {offsets = [3, 0], sizes = [1, 128], strides = [1, 1]} : vector<8x128xf32> to vector<1x128xf32>
    %c12 = arith.constant 12 : index
    %c0_28 = arith.constant 0 : index
    %88 = vector.load %arg3[%c12, %c0_28] : memref<32x128xf32, #tpu.memory_space<vmem>>, vector<4x128xf32>
    %89 = vector.broadcast %87 : vector<1x128xf32> to vector<4x128xf32>
    %90 = arith.mulf %89, %88 : vector<4x128xf32>
    %91 = arith.addf %82, %90 : vector<4x128xf32>
    %92 = vector.extract_strided_slice %13 {offsets = [0, 384], sizes = [8, 128], strides = [1, 1]} : vector<8x1024xf32> to vector<8x128xf32>
    %93 = vector.broadcast %87 : vector<1x128xf32> to vector<8x128xf32>
    %94 = arith.mulf %93, %92 : vector<8x128xf32>
    %95 = arith.addf %86, %94 : vector<8x128xf32>
    %96 = vector.extract_strided_slice %60 {offsets = [4, 0], sizes = [1, 128], strides = [1, 1]} : vector<8x128xf32> to vector<1x128xf32>
    %c16 = arith.constant 16 : index
    %c0_29 = arith.constant 0 : index
    %97 = vector.load %arg3[%c16, %c0_29] : memref<32x128xf32, #tpu.memory_space<vmem>>, vector<4x128xf32>
    %98 = vector.broadcast %96 : vector<1x128xf32> to vector<4x128xf32>
    %99 = arith.mulf %98, %97 : vector<4x128xf32>
    %100 = arith.addf %91, %99 : vector<4x128xf32>
    %101 = vector.extract_strided_slice %13 {offsets = [0, 512], sizes = [8, 128], strides = [1, 1]} : vector<8x1024xf32> to vector<8x128xf32>
    %102 = vector.broadcast %96 : vector<1x128xf32> to vector<8x128xf32>
    %103 = arith.mulf %102, %101 : vector<8x128xf32>
    %104 = arith.addf %95, %103 : vector<8x128xf32>
    %105 = vector.extract_strided_slice %60 {offsets = [5, 0], sizes = [1, 128], strides = [1, 1]} : vector<8x128xf32> to vector<1x128xf32>
    %c20 = arith.constant 20 : index
    %c0_30 = arith.constant 0 : index
    %106 = vector.load %arg3[%c20, %c0_30] : memref<32x128xf32, #tpu.memory_space<vmem>>, vector<4x128xf32>
    %107 = vector.broadcast %105 : vector<1x128xf32> to vector<4x128xf32>
    %108 = arith.mulf %107, %106 : vector<4x128xf32>
    %109 = arith.addf %100, %108 : vector<4x128xf32>
    %110 = vector.extract_strided_slice %13 {offsets = [0, 640], sizes = [8, 128], strides = [1, 1]} : vector<8x1024xf32> to vector<8x128xf32>
    %111 = vector.broadcast %105 : vector<1x128xf32> to vector<8x128xf32>
    %112 = arith.mulf %111, %110 : vector<8x128xf32>
    %113 = arith.addf %104, %112 : vector<8x128xf32>
    %114 = vector.extract_strided_slice %60 {offsets = [6, 0], sizes = [1, 128], strides = [1, 1]} : vector<8x128xf32> to vector<1x128xf32>
    %c24 = arith.constant 24 : index
    %c0_31 = arith.constant 0 : index
    %115 = vector.load %arg3[%c24, %c0_31] : memref<32x128xf32, #tpu.memory_space<vmem>>, vector<4x128xf32>
    %116 = vector.broadcast %114 : vector<1x128xf32> to vector<4x128xf32>
    %117 = arith.mulf %116, %115 : vector<4x128xf32>
    %118 = arith.addf %109, %117 : vector<4x128xf32>
    %119 = vector.extract_strided_slice %13 {offsets = [0, 768], sizes = [8, 128], strides = [1, 1]} : vector<8x1024xf32> to vector<8x128xf32>
    %120 = vector.broadcast %114 : vector<1x128xf32> to vector<8x128xf32>
    %121 = arith.mulf %120, %119 : vector<8x128xf32>
    %122 = arith.addf %113, %121 : vector<8x128xf32>
    %123 = vector.extract_strided_slice %60 {offsets = [7, 0], sizes = [1, 128], strides = [1, 1]} : vector<8x128xf32> to vector<1x128xf32>
    %c28 = arith.constant 28 : index
    %c0_32 = arith.constant 0 : index
    %124 = vector.load %arg3[%c28, %c0_32] : memref<32x128xf32, #tpu.memory_space<vmem>>, vector<4x128xf32>
    %125 = vector.broadcast %123 : vector<1x128xf32> to vector<4x128xf32>
    %126 = arith.mulf %125, %124 : vector<4x128xf32>
    %127 = arith.addf %118, %126 : vector<4x128xf32>
    %128 = vector.extract_strided_slice %13 {offsets = [0, 896], sizes = [8, 128], strides = [1, 1]} : vector<8x1024xf32> to vector<8x128xf32>
    %129 = vector.broadcast %123 : vector<1x128xf32> to vector<8x128xf32>
    %130 = arith.mulf %129, %128 : vector<8x128xf32>
    %131 = arith.addf %122, %130 : vector<8x128xf32>
    %c0_33 = arith.constant 0 : index
    %c0_34 = arith.constant 0 : index
    %132 = vector.load %arg8[%c0_33, %c0_34] : memref<20x128xf32, #tpu.memory_space<vmem>>, vector<8x128xf32>
    tpu.vector_store %arg8[%c0_33, %c0_34], %60 {strides = array<i32>} : memref<20x128xf32, #tpu.memory_space<vmem>>, vector<8x128xf32>,
    %c8_35 = arith.constant 8 : index
    %c0_36 = arith.constant 0 : index
    %133 = vector.load %arg8[%c8_35, %c0_36] : memref<20x128xf32, #tpu.memory_space<vmem>>, vector<8x128xf32>
    tpu.vector_store %arg8[%c8_35, %c0_36], %131 {strides = array<i32>} : memref<20x128xf32, #tpu.memory_space<vmem>>, vector<8x128xf32>,
    %c16_37 = arith.constant 16 : index
    %c0_38 = arith.constant 0 : index
    %134 = vector.load %arg8[%c16_37, %c0_38] : memref<20x128xf32, #tpu.memory_space<vmem>>, vector<4x128xf32>
    tpu.vector_store %arg8[%c16_37, %c0_38], %127 {strides = array<i32>} : memref<20x128xf32, #tpu.memory_space<vmem>>, vector<4x128xf32>,
    return
  }
  func.func @transform_0(%arg0: i32) -> (i32, i32) {
    %c0_i32 = arith.constant 0 : i32
    %c0_i32_0 = arith.constant 0 : i32
    return %c0_i32, %arg0 : i32, i32
  }
  func.func @transform_1(%arg0: i32) -> (i32, i32, i32) {
    %c0_i32 = arith.constant 0 : i32
    %c0_i32_0 = arith.constant 0 : i32
    %c0_i32_1 = arith.constant 0 : i32
    return %arg0, %c0_i32, %c0_i32_0 : i32, i32, i32
  }
  func.func @transform_2(%arg0: i32) -> (i32, i32) {
    %c0_i32 = arith.constant 0 : i32
    %c0_i32_0 = arith.constant 0 : i32
    return %c0_i32, %arg0 : i32, i32
  }
  func.func @transform_3(%arg0: i32) -> (i32, i32) {
    %c0_i32 = arith.constant 0 : i32
    %c0_i32_0 = arith.constant 0 : i32
    %c0_i32_1 = arith.constant 0 : i32
    return %c0_i32, %c0_i32_0 : i32, i32
  }
  func.func @transform_4(%arg0: i32) -> (i32, i32) {
    %c0_i32 = arith.constant 0 : i32
    %c0_i32_0 = arith.constant 0 : i32
    %c0_i32_1 = arith.constant 0 : i32
    return %c0_i32, %c0_i32_0 : i32, i32
  }
  func.func @transform_5(%arg0: i32) -> (i32, i32) {
    %c0_i32 = arith.constant 0 : i32
    %c0_i32_0 = arith.constant 0 : i32
    %c0_i32_1 = arith.constant 0 : i32
    return %c0_i32, %c0_i32_0 : i32, i32
  }
  func.func @transform_6(%arg0: i32) -> (i32, i32) {
    %c0_i32 = arith.constant 0 : i32
    %c0_i32_0 = arith.constant 0 : i32
    %c0_i32_1 = arith.constant 0 : i32
    return %c0_i32, %c0_i32_0 : i32, i32
  }
  func.func @transform_7(%arg0: i32) -> (i32, i32) {
    %c0_i32 = arith.constant 0 : i32
    %c0_i32_0 = arith.constant 0 : i32
    return %c0_i32, %arg0 : i32, i32
  }
}

</mosaic_0001>

<bundles_post_ra>
// kernel: tpu_custom_call.1
= control target key start
LH: loop header
LB: loop body
LE: loop exit
PB: predicated region body
PF: predicated region fallthrough
CT: control target
= control target key end

     0   :  { %s1570_s0 = inlined_call_operand.vmem [shape: f32[8,256], index: 0, kind: input, shape index: {}]   ;;  %s1571_s1 = inlined_call_operand.hbm [shape: f32[2,8,1024], index: 1, kind: input, shape index: {}]   ;;  %s1572_s2 = inlined_call_operand.hbm [shape: f32[32,256], index: 2, kind: input, shape index: {}]   ;;  %s1573_s3 = inlined_call_operand.vmem [shape: f32[16,8], index: 3, kind: input, shape index: {}]   ;;  %s1574_s4 = inlined_call_operand.vmem [shape: f32[16,1], index: 4, kind: input, shape index: {}]   ;;  %s1575_s5 = inlined_call_operand.vmem [shape: f32[16,16], index: 5, kind: input, shape index: {}]   ;;  %s1576_s6 = inlined_call_operand.vmem [shape: f32[16,1], index: 6, kind: input, shape index: {}]   ;;  %s1577_s7 = inlined_call_operand.hbm [shape: f32[20,256], index: 7, kind: output, shape index: {}]  }
   0x1   :  { %1579 = sst [smem:[#allocation13_spill]] %s1571_s1 }
   0x2   :  { %12 = vsyncpa [#allocation3], 0 }
   0x3   :  { %14 = vsyncpa [#allocation3 + $0x1], 0 }
   0x4   :  { %15 = vsyncpa [#allocation6], 0 }
   0x5   :  { %17 = vsyncpa [#allocation6 + $0x1], 0 }
   0x6   :  { %18 = vsyncpa [#allocation4], 0 }
   0x7   :  { %20 = vsyncpa [#allocation4 + $0x1], 0  ;;  %s1260_s24 = smov 0   ;;  %s1262_s25 = smov 0  }
   0x8   :  { %s1264_s26 = smov 0   ;;  %s1266_s27 = smov 0  }
   0x9 LB: > { %1580 = sst [smem:[#allocation11_spill]] %s1207_s26  ;;  %s1281_s28 = sadd.s32 4294967295, %s1211_s27   ;;  %s1211_s27 = sphi %s1266_s27, %s1593_s27   ;;  %s1207_s26 = sphi %s1264_s26, %s1590_s26   ;;  %s1203_s25 = sphi %s1262_s25, %s1592_s25   ;;  %s1199_s24 = sphi %s1260_s24, %s1591_s24  }
   0xa   : > { %s942_s29 = sadd.s32 4294967294, %s1211_s27   ;;  %s1285_s30 = sadd.s32 1, %s1211_s27  }
   0xb   : > { %s59_s8 = sadd.s32 1, %s1207_s26  ;;  %s56_s9 = ssub.s32 %s1211_s27, %s1285_s30 }
   0xc   : > { %p66_p0 = scmp.ne.s32.totalorder %s1207_s26, %s1203_s25  ;;  %p57_p1 = scmp.eq.s32.totalorder %s56_s9, 0 }
   0xd   : > { %p67_p2 = scmp.eq.s32.totalorder %s1211_s27, 0  ;;  %p72_p3 = scmp.ne.s32.totalorder %s1203_s25, %s1199_s24 }
   0xe   : > { %p73_p4 = scmp.eq.s32.totalorder %s1281_s28, 0  ;;  %p206_p7 = scmp.eq.s32.totalorder %s1281_s28, 1 }
   0xf   : > { %s1297_s10 = scalar_select %p57_p1, %s1207_s26, %s59_s8  }
  0x10   : > { %p1299_p5 = por %p67_p2, %p66_p0  ;;  %p1303_p6 = por %p73_p4, %p72_p3 }
  0x11   : > { %1581 = sst [smem:[#allocation12_spill]] %s1297_s10  ;;  %p212_p8 = scmp.eq.s32.totalorder %s942_s29, 1 }
  0x12   : > { %p944_p9 = scmp.ge.s32.totalorder %s1211_s27, 2  ;;  %p998_p10 = scmp.lt.s32.totalorder %s1211_s27, 2 }
  0x13   : > { %p1310_p11 = por %p206_p7, %p66_p0  ;;  %p1314_p12 = por %p212_p8, %p72_p3 }
  0x14   : > { %s1319_s15 = sand.u32 1, %s1207_s26   ;;  %s977_s16 = sshll.u32 %s1211_s27, 6 }
  0x15   : > { %s945_s17 = sshll.u32 %s1319_s15, 6  ;;  %s1586_s1 = sld [smem:[#allocation13_spill]] }
  0x16   : > { %s255_s22 = scalar_lea.vmem [#allocation2], %s945_s17  ;;  %p1328_p13 = pnand %p998_p10, %p1299_p5 }
  0x17   : > { %s264_s23 = sshll.u32 %s255_s22, 4  ;;  %s948_s8 = sshll.u32 %s1319_s15, 5  ;;  %s265_s23 = int_to_ptr.vmem [resolvable:$true] %s264_s23 }
  0x18   : > { %p950_p0 = scmp.ge.s32.totalorder %s1211_s27, 1  ;;  %s252_s9 = scalar_lea.sflag [#allocation3], %s1319_s15 }
  0x19   : > { %p1085_p2 = pneg %p1328_p13 }
  0x1b   : > { %s260_s20 = scalar_lea.hbm %s1586_s1, %s977_s16  ;;  %s1088_s17 = scalar_lea.hbm %s1586_s1, 128 }
  0x1c   : > { %s262_s21 = sshll.u32 %s260_s20, 4  ;;  %s263_s21 = int_to_ptr.hbm [resolvable:$true] %s262_s21 }
  0x1d   : > { %s1081_s10 = sshra.s32 %s263_s21, 4  ;;  %s1082_s10 = int_to_ptr.hbm [resolvable:$true] %s1081_s10 }
  0x1e   : > { %s1083_s26 = scalar_lea.hbm %s1082_s10, 64  ;;  %p1089_p5 = scmp.lt.s32.totalorder %s1082_s10, %s1586_s1 }
  0x1f   : > { %p1084_p1 = scmp.ne.s32.totalorder %s1082_s10, %s1083_s26  ;;  %p1090_p7 = scmp.lt.s32.totalorder %s1088_s17, %s1083_s26 }
  0x21   : > { %p1086_p3 = pnand %p1085_p2, %p1084_p1  ;;  %p1091_p8 = por %p1090_p7, %p1089_p5 }
  0x23   : > { %p1087_p4 = pneg %p1086_p3 }
  0x25   : > { %p1092_p10 = pnand %p1091_p8, %p1087_p4 }
  0x27   : > { %1095 = shalt.err (!%p1092_p10)
}
  0x28   : > { %990 = dma.hbm_to_vmem [thread:$0]  (!%p1328_p13), %s263_s21, 1024, %s265_s23, %s252_s9  }
  0x29   : > { %p290_p1 = scmp.lt.s32.totalorder %s1211_s27, 3  ;;  %s949_s20 = sshll.u32 %s1211_s27, 3 }
  0x2a   : > { %s279_s16 = scalar_lea.hbm %s1572_s2, %s949_s20  ;;  %s275_s18 = scalar_lea.vmem [#allocation5], %s948_s8 }
  0x2b   : > { %s282_s10 = sshll.u32 %s275_s18, 4  ;;  %p1355_p3 = pnand %p950_p0, %p290_p1  ;;  %s283_s10 = int_to_ptr.vmem [resolvable:$true] %s282_s10 }
  0x2c   : > { %s280_s17 = sshll.u32 %s279_s16, 4  ;;  %s272_s19 = scalar_lea.sflag [#allocation6], %s1319_s15  ;;  %s281_s17 = int_to_ptr.hbm [resolvable:$true] %s280_s17 }
  0x2d   : > { %s1111_s1 = sshra.s32 %s281_s17, 4  ;;  %s1118_s9 = scalar_lea.hbm %s1572_s2, 64  ;;  %s1112_s1 = int_to_ptr.hbm [resolvable:$true] %s1111_s1 }
  0x2e   : > { %s1113_s21 = scalar_lea.hbm %s1112_s1, 32  ;;  %p1119_p0 = scmp.lt.s32.totalorder %s1112_s1, %s1572_s2 }
  0x2f   : > { %p1114_p4 = scmp.ne.s32.totalorder %s1112_s1, %s1113_s21  ;;  %p1120_p8 = scmp.lt.s32.totalorder %s1118_s9, %s1113_s21 }
  0x31   : > { %p1116_p5 = pnand %p1114_p4, %p1085_p2  ;;  %p1121_p10 = por %p1120_p8, %p1119_p0 }
  0x33   : > { %p1117_p7 = pneg %p1116_p5 }
  0x35   : > { %p1122_p1 = pnand %p1121_p10, %p1117_p7 }
  0x37   : > { %1125 = shalt.err (!%p1122_p1)
}
  0x38   : > { %s1213_s15 = smov 256   ;;  %s1214_s11 = smov 128  }
  0x39   : > { %s1215_s16 = smov 8   ;;  %294 = sbr.rel (%p1355_p3) target bundleno = 482 (0x1e2), region = 48 }
  0x3a   : > { %993 = dma.hbm_to_vmem [thread:$0]  (!%p1328_p13), %s281_s17, 512, %s283_s10, %s272_s19, %s1213_s15, %s1214_s11, %s1215_s16  }
  0x3b   : > { %s1374_s18 = sand.u32 (!%p1355_p3), 1, %s1203_s25  }
  0x3c   : > { %s951_s1 = sshll.u32 (!%p1355_p3), %s1374_s18, 6  ;;  %s297_s21 = scalar_lea.sflag (!%p1355_p3), [#allocation3], %s1374_s18 }
  0x3d   : > { %s1378_s23 = scalar_lea.vmem (!%p1355_p3), [#allocation2], %s951_s1 }
  0x3e   : > { %1186 = dma.done.wait (%p1303_p6), %s297_s21, 1024  }
  0x3f   : > { %1188 = vsyncadd (%p1303_p6), %s297_s21, 4294966272  ;;  %s952_s29 = sshll.u32 %s1374_s18, 5  ;;  %s307_s10 = scalar_lea.sflag [#allocation6], %s1374_s18 }
  0x40   : > { %s1386_s26 = scalar_lea.vmem [#allocation5], %s952_s29 }
  0x41   : > { %1190 = dma.done.wait (%p1303_p6), %s307_s10, 512  }
  0x42   : > { %1192 = vsyncadd (%p1303_p6), %s307_s10, 4294966784  ;;  %p351_p13 = scmp.lt.s32.totalorder %s1281_s28, 1  ;;  %v1216_v0 = vmov 0   ;;  %vm374_vm0 = vcmask 64512   ;;  %v1398_v2 = vld [vmem:[%s1378_s23] sm:$0xff]  ;;  %v356_v4 = vld [vmem:[%s1573_s3 + $0x8] sm:$0xff] }
  0x43   : > { %1039 = vset.pattern.permute.xlu0 %v1216_v0  ;;  %1040 = vset.pattern.permute.xlu1 %v1216_v0  ;;  %v355_v3 = vld [vmem:[%s1573_s3] sm:$0xff]  ;;  %v358_v5 = vld [vmem:[%s1574_s4 + $0x8] sm:$0xff]  ;;  %v1415_v7 = vld [vmem:[%s1378_s23 + $0x10] sm:$0xff]  ;;  %vm416_vm1 = vcmask 130048   ;;  %vm726_vm2 = vcmask 1040384   ;;  %vm728_vm3 = vcmask 1041408  }
  0x44   : > { %s352_s17 = scalar_select %p351_p13, %s1281_s28, 1  ;;  %v1410_v6 = vld [vmem:[%s1378_s23 + $0x8] sm:$0xff]  ;;  %979 = vmatpush.msra.mxu2 %v1398_v2  ;;  %v1418_v8 = vld [vmem:[%s1378_s23 + $0x18] sm:$0xff]  ;;  %v1423_v9 = vld [vmem:[%s1378_s23 + $0x20] sm:$0xff]  ;;  %371 = vperm.xlu0 %1039, %v358_v5   ;;  %vm730_vm4 = vcmask 1042432   ;;  %vm732_vm5 = vcmask 1043456  }
  0x45   : > { %959 = vmatmul.msk.f32.vlgmr.msra.gmra.mxu2 %vm374_vm0, %v356_v4  ;;  %v1426_v10 = vld [vmem:[%s1378_s23 + $0x30] sm:$0xff]  ;;  %v1430_v11 = vld [vmem:[%s1378_s23 + $0x38] sm:$0xff]  ;;  %v357_v12 = vld [vmem:[%s1574_s4] sm:$0xff]  ;;  %vm734_vm6 = vcmask 1044480   ;;  %vm736_vm7 = vcmask 1045504   ;;  %vm738_vm8 = vcmask 1046528  }
  0x46   : > { %s953_s19 = sshll.u32 %s352_s17, 3  ;;  %538 = vmatpush.msrb.mxu2 %v1418_v8  ;;  %v361_v14 = vld [vmem:[%s1576_s6] sm:$0xff]  ;;  %v362_v15 = vld [vmem:[%s1576_s6 + $0x8] sm:$0xff]  ;;  %s974_s11 = sshll.u32 %s1281_s28, 3 }
  0x47   : > { %s354_s20 = scalar_lea.vmem %s1570_s0, %s953_s19  ;;  %408 = vperm.xlu1 %1040, %v361_v14   ;;  %v359_v22 = vld [vmem:[%s1575_s5] sm:$0xff]  ;;  %v1468_v24 = vld [vmem:[%s1378_s23 + $0x28] sm:$0xff]  ;;  %s980_s23 = smul.u32 24, %s1374_s18 }
  0x48   : > { %v363_v1 = vld [vmem:[%s354_s20] sm:$0xff]  ;;  %630 = vmatpush.msra.mxu2 %v1430_v11  ;;  %v360_v25 = vld [vmem:[%s1575_s5 + $0x8] sm:$0xff]  ;;  %s830_s21 = scalar_lea.hbm %s1577_s7, %s974_s11  ;;  %s1161_s9 = scalar_lea.hbm %s1577_s7, 48 }
  0x49   : > { %396 = vmatpush.msra.mxu0 %v363_v1  ;;  %978 = vmatpush.msra.mxu3 %v363_v1  ;;  %s1517_s15 = scalar_lea.vmem [#allocation7], %s980_s23  ;;  %s833_s29 = sshll.u32 %s830_s21, 4  ;;  %s834_s29 = int_to_ptr.hbm [resolvable:$true] %s833_s29 }
  0x4a   : > { %954 = vmatmul.msk.f32.vlgmr.msra.gmra.mxu0 %vm374_vm0, %v355_v3  ;;  %955 = vmatmul.msk.f32.vlgmr.msra.gmra.mxu3 %vm374_vm0, %v356_v4  ;;  %s831_s28 = sshll.u32 %s1517_s15, 4  ;;  %s1155_s10 = sshra.s32 %s834_s29, 4  ;;  %s832_s28 = int_to_ptr.vmem [resolvable:$true] %s831_s28  ;;  %s1156_s10 = int_to_ptr.hbm [resolvable:$true] %s1155_s10 }
  0x4b   : > { %492 = vmatpush.msrb.mxu3 %v1410_v6  ;;  %515 = vmatpush.msrb.mxu0 %v1415_v7  ;;  %s1157_s17 = scalar_lea.hbm %s1156_s10, 24  ;;  %p1162_p4 = scmp.lt.s32.totalorder %s1156_s10, %s1577_s7 }
  0x4c   : > { %366 = vperm.xlu0 %1039, %v357_v12   ;;  %p1158_p6 = scmp.ne.s32.totalorder %s1156_s10, %s1157_s17  ;;  %p1163_p5 = scmp.lt.s32.totalorder %s1161_s9, %s1157_s17 }
  0x4d   : > { %561 = vmatpush.msra.mxu3 %v1423_v9  ;;  %607 = vmatpush.msra.mxu0 %v1426_v10 }
  0x4e   : > { %964 = vmatmul.msk.f32.vlgmr.msrb.gmra.mxu2 %vm374_vm0, %v355_v3  ;;  %p1159_p2 = pnand %p1158_p6, %p1310_p11  ;;  %p1164_p7 = por %p1163_p5, %p1162_p4 }
  0x4f   : > { %413 = vperm.xlu1 %1040, %v362_v15  }
  0x50   : > { %p1160_p3 = pneg %p1159_p2 }
  0x52   : > { %962 = vmatmul.msk.f32.vlgmr.msrb.gmra.mxu0 %vm374_vm0, %v355_v3  ;;  %960 = vmatmul.msk.f32.vlgmr.msrb.gmra.mxu3 %vm374_vm0, %v355_v3  ;;  %p1165_p0 = pnand %p1164_p7, %p1160_p3 }
  0x56   : > { %965 = vmatmul.msk.f32.gmra.mxu2 %vm374_vm0, %v356_v4 }
  0x5a   : > { %963 = vmatmul.msk.f32.gmra.mxu0 %vm374_vm0, %v356_v4  ;;  %961 = vmatmul.msk.f32.gmra.mxu3 %vm374_vm0, %v356_v4 }
  0x5e   : > { %972 = vmatmul.msk.f32.vlgmr.msra.gmra.mxu2 %vm374_vm0, %v355_v3 }
  0x62   : > { %970 = vmatmul.msk.f32.vlgmr.msra.gmra.mxu0 %vm374_vm0, %v355_v3  ;;  %966 = vmatmul.msk.f32.vlgmr.msra.gmra.mxu3 %vm374_vm0, %v355_v3 }
  0x66   : > { %973 = vmatmul.msk.f32.gmra.mxu2 %vm374_vm0, %v356_v4 }
  0x6a   : > { %971 = vmatmul.msk.f32.gmra.mxu0 %vm374_vm0, %v356_v4  ;;  %967 = vmatmul.msk.f32.gmra.mxu3 %vm374_vm0, %v356_v4 }
  0xb6   : > { %v1452_v13 = vpop.permute.xlu0 %371 }
  0xb9   : > { %v409_v34 = vpop.permute.xlu1 %408 }
  0xbe   : > { %v1460_v16 = vpop.permute.xlu0 %366 }
  0xc1   : > { %v414_v43 = vpop.permute.xlu1 %413 }
  0xc7   : > { %v398_v17 = vpop.f32.mrf.mxu0 }
  0xc8   : > { %v399_v19 = vadd.f32 %v398_v17, %v1460_v16  ;;  %v474_v26 = vpop.f32.mrf.mxu2 }
  0xc9   : > { %v475_v42 = vadd.f32 %v474_v26, %v1452_v13 }
  0xcd   : > { %v401_v18 = vpop.f32.mrf.mxu3 }
  0xce   : > { %v402_v20 = vadd.f32 %v401_v18, %v1452_v13 }
  0xcf   : > { %v517_v28 = vpop.f32.mrf.mxu0 }
  0xd0   : > { %1041 = vtanh.f32 %v402_v20  ;;  %v518_v44 = vadd.f32 %v517_v28, %v1460_v16 }
  0xd1   : > { %1043 = vtanh.f32 %v399_v19  ;;  %v540_v29 = vpop.f32.mrf.mxu2 }
  0xd2   : > { %v541_v47 = vadd.f32 %v540_v29, %v1460_v16 }
  0xd5   : > { %v494_v27 = vpop.f32.mrf.mxu3 }
  0xd6   : > { %v1042_v21 = vpop.eup %1041  ;;  %v495_v40 = vadd.f32 %v494_v27, %v1460_v16 }
  0xd7   : > { %437 = vmatpush.msra.mxu1 %v1042_v21  ;;  %v1044_v23 = vpop.eup %1043  ;;  %v520_v31 = vpop.f32.mrf.mxu0 }
  0xd8   : > { %v521_v41 = vadd.f32 %v520_v31, %v1452_v13 }
  0xd9   : > { %438 = vmatpush.msra.mxu1 %v1044_v23  ;;  %v543_v32 = vpop.f32.mrf.mxu2 }
  0xda   : > { %956 = vmatmul.msk.f32.vlgmr.msra.gmra.mxu1 %vm416_vm1, %v359_v22  ;;  %v544_v45 = vadd.f32 %v543_v32, %v1452_v13 }
  0xdb   : > { %469 = vmatpush.msrb.mxu1 %v1398_v2 }
  0xdd   : > { %584 = vmatpush.msra.mxu1 %v1468_v24  ;;  %v497_v30 = vpop.f32.mrf.mxu3 }
  0xde   : > { %v498_v38 = vadd.f32 %v497_v30, %v1452_v13 }
  0xdf   : > { %v609_v36 = vpop.f32.mrf.mxu0 }
  0xe0   : > { %1045 = vtanh.f32 %v498_v38  ;;  %v610_v62 = vadd.f32 %v609_v36, %v1460_v16 }
  0xe1   : > { %v632_v37 = vpop.f32.mrf.mxu2  ;;  %1047 = vtanh.f32 %v495_v40 }
  0xe2   : > { %957 = vmatmul.msk.f32.gmra.mxu1 %vm416_vm1, %v360_v25  ;;  %1049 = vtanh.f32 %v521_v41  ;;  %v633_v1 = vadd.f32 %v632_v37, %v1460_v16 }
  0xe3   : > { %1051 = vtanh.f32 %v475_v42 }
  0xe4   : > { %1053 = vtanh.f32 %v518_v44 }
  0xe5   : > { %v563_v35 = vpop.f32.mrf.mxu3  ;;  %1055 = vtanh.f32 %v544_v45 }
  0xe6   : > { %v1046_v54 = vpop.eup %1045  ;;  %v564_v55 = vadd.f32 %v563_v35, %v1460_v16  ;;  %1057 = vtanh.f32 %v541_v47 }
  0xe7   : > { %v612_v49 = vpop.f32.mrf.mxu0  ;;  %v1048_v59 = vpop.eup %1047 }
  0xe8   : > { %v613_v57 = vadd.f32 %v612_v49, %v1452_v13  ;;  %v1050_v61 = vpop.eup %1049 }
  0xe9   : > { %v635_v51 = vpop.f32.mrf.mxu2  ;;  %v1052_v0 = vpop.eup %1051 }
  0xea   : > { %958 = vmatmul.msk.f32.vlgmr.msrb.gmra.mxu1 %vm374_vm0, %v355_v3  ;;  %v636_v60 = vadd.f32 %v635_v51, %v1452_v13 }
  0xed   : > { %v566_v46 = vpop.f32.mrf.mxu3 }
  0xee   : > { %v567_v50 = vadd.f32 %v566_v46, %v1452_v13 }
  0xf2   : > { %968 = vmatmul.msk.f32.vlgmr.msra.gmra.mxu1 %vm374_vm0, %v355_v3 }
  0xfa   : > { %969 = vmatmul.msk.f32.gmra.mxu1 %vm374_vm0, %v356_v4  ;;  %v1054_v4 = vpop.eup %1053 }
  0xfb   : > { %v1056_v12 = vpop.eup %1055 }
  0xfc   : > { %v1058_v15 = vpop.eup %1057 }
 0x157   : > { %v440_v33 = vpop.f32.mrf.mxu1 }
 0x158   : > { %v1488_v52 = vadd.f32 %v440_v33, %v409_v34 }
 0x15a   : > { %v663_v63 = vmul.f32 %v1048_v59, %v1488_v52  ;;  %v672_v14 = vmul.f32 %v1054_v4, %v1488_v52  ;;  %v681_v22 = vmul.f32 %v1058_v15, %v1488_v52 }
 0x15f   : > { %v443_v39 = vpop.f32.mrf.mxu1 }
 0x160   : > { %v1485_v48 = vadd.f32 %v443_v39, %v414_v43 }
 0x162   : > { %v664_v58 = vmul.f32 %v1046_v54, %v1485_v48  ;;  %v673_v3 = vmul.f32 %v1050_v61, %v1485_v48  ;;  %v682_v17 = vmul.f32 %v1056_v12, %v1485_v48  ;;  %v655_v25 = vmul.f32 %v1052_v0, %v1485_v48 }
 0x164   : > { %v665_v5 = vadd.f32 %v664_v58, %v663_v63  ;;  %v674_v20 = vadd.f32 %v673_v3, %v672_v14  ;;  %v683_v30 = vadd.f32 %v682_v17, %v681_v22 }
 0x166   : > { %v666_v26 = vrot.slane %v665_v5, 4  ;;  %v675_v35 = vrot.slane %v674_v20, 4  ;;  %v684_v47 = vrot.slane %v683_v30, 4 }
 0x167   : > { %v471_v53 = vpop.f32.mrf.mxu1 }
 0x168   : > { %v472_v56 = vadd.f32 %v471_v53, %v1460_v16  ;;  %v667_v40 = vadd.f32 %v666_v26, %v665_v5  ;;  %v676_v49 = vadd.f32 %v675_v35, %v674_v20 }
 0x16a   : > { %1059 = vtanh.f32 %v472_v56  ;;  %v668_v54 = vrot.slane %v667_v40, 2  ;;  %v677_v58 = vrot.slane %v676_v49, 2 }
 0x16b   : > { %1061 = vtanh.f32 %v567_v50 }
 0x16c   : > { %1063 = vtanh.f32 %v564_v55  ;;  %v678_v4 = vadd.f32 %v677_v58, %v676_v49 }
 0x16d   : > { %1065 = vtanh.f32 %v613_v57  ;;  %v685_v57 = vadd.f32 %v684_v47, %v683_v30 }
 0x16e   : > { %1067 = vtanh.f32 %v636_v60  ;;  %v669_v60 = vadd.f32 %v668_v54, %v667_v40 }
 0x16f   : > { %1069 = vtanh.f32 %v610_v62  ;;  %v586_v18 = vpop.f32.mrf.mxu1 }
 0x170   : > { %v1060_v19 = vpop.eup %1059  ;;  %1071 = vtanh.f32 %v633_v1  ;;  %v587_v36 = vadd.f32 %v586_v18, %v1460_v16  ;;  %v686_v1 = vrot.slane %v685_v57, 2 }
 0x171   : > { %v1062_v21 = vpop.eup %1061  ;;  %v654_v23 = vmul.f32 %v1060_v19, %v1488_v52 }
 0x172   : > { %v1064_v27 = vpop.eup %1063  ;;  %v691_v28 = vmul.f32 %v1062_v21, %v1485_v48  ;;  %1073 = vtanh.f32 %v587_v36  ;;  %v687_v19 = vadd.f32 %v686_v1, %v685_v57  ;;  %v679_v21 = vrot.slane %v678_v4, 1 }
 0x173   : > { %v1066_v29 = vpop.eup %1065  ;;  %v656_v31 = vadd.f32 %v655_v25, %v654_v23  ;;  %v690_v33 = vmul.f32 %v1064_v27, %v1488_v52 }
 0x174   : > { %v1068_v32 = vpop.eup %1067  ;;  %v709_v34 = vmul.f32 %v1066_v29, %v1485_v48  ;;  %v688_v29 = vrot.slane %v687_v19, 1 }
 0x175   : > { %v1070_v37 = vpop.eup %1069  ;;  %v718_v38 = vmul.f32 %v1068_v32, %v1485_v48  ;;  %v657_v39 = vrot.slane %v656_v31, 4  ;;  %v692_v43 = vadd.f32 %v691_v28, %v690_v33 }
 0x176   : > { %v1072_v41 = vpop.eup %1071  ;;  %v708_v42 = vmul.f32 %v1070_v37, %v1488_v52  ;;  %v689_v35 = vadd.f32 %v688_v29, %v687_v19 }
 0x177   : > { %v717_v44 = vmul.f32 %v1072_v41, %v1488_v52  ;;  %v658_v45 = vadd.f32 %v657_v39, %v656_v31  ;;  %v589_v46 = vpop.f32.mrf.mxu1  ;;  %v693_v55 = vrot.slane %v692_v43, 4  ;;  %v680_v31 = vadd.f32 %v679_v21, %v678_v4  ;;  %v774_v21 = vld [vmem:[%s1386_s26 + $0x4] sm:$0xf] }
 0x178   : > { %v590_v50 = vadd.f32 %v589_v46, %v1452_v13  ;;  %v710_v51 = vadd.f32 %v709_v34, %v708_v42  ;;  %v1074_v62 = vpop.eup %1073  ;;  %v670_v13 = vrot.slane %v669_v60, 1 }
 0x179   : > { %v719_v16 = vadd.f32 %v718_v38, %v717_v44  ;;  %v659_v53 = vrot.slane %v658_v45, 2  ;;  %v694_v63 = vadd.f32 %v693_v55, %v692_v43  ;;  %v699_v12 = vmul.f32 %v1074_v62, %v1488_v52 }
 0x17a   : > { %1075 = vtanh.f32 %v590_v50  ;;  %v711_v59 = vrot.slane %v710_v51, 4  ;;  %v671_v23 = vadd.f32 %v670_v13, %v669_v60 }
 0x17b   : > { %v660_v56 = vadd.f32 %v659_v53, %v658_v45  ;;  %v720_v61 = vrot.slane %v719_v16, 4  ;;  %v695_v17 = vrot.slane %v694_v63, 2 }
 0x17c   : > { %v712_v5 = vadd.f32 %v711_v59, %v710_v51 }
 0x17d   : > { %v661_v0 = vrot.slane %v660_v56, 1  ;;  %v721_v15 = vadd.f32 %v720_v61, %v719_v16  ;;  %v696_v27 = vadd.f32 %v695_v17, %v694_v63 }
 0x17e   : > { %v713_v22 = vrot.slane %v712_v5, 2 }
 0x17f   : > { %v662_v18 = vadd.f32 %v661_v0, %v660_v56  ;;  %v722_v26 = vrot.slane %v721_v15, 2  ;;  %v697_v34 = vrot.slane %v696_v27, 1 }
 0x180   : > { %v1076_v3 = vpop.eup %1075  ;;  %v714_v52 = vadd.f32 %v713_v22, %v712_v5 }
 0x181   : > { %v700_v14 = vmul.f32 %v1076_v3, %v1485_v48  ;;  %v727_v28 = vsel %vm726_vm2, %v662_v18, %v671_v23  ;;  %v723_v48 = vadd.f32 %v722_v26, %v721_v15  ;;  %v698_v41 = vadd.f32 %v697_v34, %v696_v27  ;;  %v780_v26 = vld [vmem:[%s1386_s26 + $0x8] sm:$0xf] }
 0x182   : > { %v729_v33 = vsel %vm728_vm3, %v727_v28, %v680_v31  ;;  %v715_v37 = vrot.slane %v714_v52, 1 }
 0x183   : > { %v701_v20 = vadd.f32 %v700_v14, %v699_v12  ;;  %v724_v39 = vrot.slane %v723_v48, 1  ;;  %v731_v40 = vsel %vm730_vm4, %v729_v33, %v689_v35 }
 0x184   : > { %v716_v43 = vadd.f32 %v715_v37, %v714_v52  ;;  %v733_v44 = vsel %vm732_vm5, %v731_v40, %v698_v41  ;;  %v786_v52 = vld [vmem:[%s1386_s26 + $0xc] sm:$0xf]  ;;  %v798_v41 = vld [vmem:[%s1386_s26 + $0x14] sm:$0xf] }
 0x185   : > { %v702_v25 = vrot.slane %v701_v20, 4  ;;  %v725_v45 = vadd.f32 %v724_v39, %v723_v48 }
 0x187   : > { %v703_v30 = vadd.f32 %v702_v25, %v701_v20  ;;  %v770_v20 = vld [vmem:[%s1386_s26] sm:$0xf] }
 0x189   : > { %v704_v32 = vrot.slane %v703_v30, 2 }
 0x18b   : > { %v705_v36 = vadd.f32 %v704_v32, %v703_v30 }
 0x18d   : > { %v706_v38 = vrot.slane %v705_v36, 1 }
 0x18f   : > { %v707_v42 = vadd.f32 %v706_v38, %v705_v36  ;;  %v792_v36 = vld [vmem:[%s1386_s26 + $0x10] sm:$0xf] }
 0x191   : > { %v735_v46 = vsel %vm734_vm6, %v733_v44, %v707_v42 }
 0x192   : > { %v737_v47 = vsel %vm736_vm7, %v735_v46, %v716_v43  ;;  %v804_v46 = vld [vmem:[%s1386_s26 + $0x18] sm:$0xf] }
 0x193   : > { %v739_v49 = vsel %vm738_vm8, %v737_v47, %v725_v45 }
 0x194   : > { %v740_v50 = vrot.slane %v739_v49, 4 }
 0x196   : > { %v741_v51 = vmax.f32 %v739_v49, %v740_v50 }
 0x198   : > { %v742_v16 = vrot.slane %v741_v51, 2 }
 0x19a   : > { %v743_v53 = vmax.f32 %v741_v51, %v742_v16 }
 0x19c   : > { %v744_v54 = vrot.slane %v743_v53, 1 }
 0x19e   : > { %v745_v55 = vmax.f32 %v743_v53, %v744_v54 }
 0x1a0   : > { %v746_v56 = vsub.f32 %v739_v49, %v745_v55 }
 0x1a2   : > { %v747_v57 = vmul.f32 1.442695, %v746_v56 }
 0x1a4   : > { %1077 = vpow2.f32 %v747_v57 }
 0x1aa   : > { %v1078_v58 = vpop.eup %1077 }
 0x1ab   : > { %v749_v59 = vrot.slane %v1078_v58, 4 }
 0x1ad   : > { %v750_v60 = vadd.f32 %v1078_v58, %v749_v59 }
 0x1af   : > { %v751_v61 = vrot.slane %v750_v60, 2 }
 0x1b1   : > { %v752_v62 = vadd.f32 %v751_v61, %v750_v60 }
 0x1b3   : > { %v753_v63 = vrot.slane %v752_v62, 1 }
 0x1b5   : > { %v754_v0 = vadd.f32 %v753_v63, %v752_v62 }
 0x1b7   : > { %1079 = vrcp.f32 %v754_v0  ;;  %v766_v5 = vand.u32 2147483648, %v754_v0  ;;  %v764_v12 = vand.u32 2147483647, %v754_v0  ;;  %vm760_vm10 = vweird.f32 %v754_v0 }
 0x1b9   : > { %v767_v15 = vor.u32 1.1754944e-38, %v766_v5  ;;  %vm765_vm12 = vcmp.eq.f32.partialorder %v764_v12, 8.507059e+37 }
 0x1bd   : > { %v1080_v1 = vpop.eup %1079 }
 0x1be   : > { %v756_v3 = vmul.f32 %v1080_v1, %v754_v0  ;;  %vm761_vm9 = vweird.f32 %v1080_v1 }
 0x1bf   : > { %vm762_vm11 = vmor %vm760_vm10, %vm761_vm9 }
 0x1c0   : > { %v757_v4 = vsub.f32 1.0, %v756_v3 }
 0x1c2   : > { %v758_v13 = vmul.f32 %v1080_v1, %v757_v4 }
 0x1c4   : > { %v759_v14 = vadd.f32 %v1080_v1, %v758_v13 }
 0x1c6   : > { %v763_v17 = vsel %vm762_vm11, %v1080_v1, %v759_v14 }
 0x1c7   : > { %v768_v18 = vsel %vm765_vm12, %v767_v15, %v763_v17 }
 0x1c8   : > { %v769_v19 = vmul.f32 %v1078_v58, %v768_v18 }
 0x1ca   : > { %v771_v22 = vperm.slane %v769_v19, 0  ;;  %v775_v23 = vperm.slane %v769_v19, 1  ;;  %v781_v25 = vperm.slane %v769_v19, 2  ;;  %816 = vst [vmem:[%s1517_s15] sm:$0xff] %v769_v19  ;;  %v787_v27 = vperm.slane %v769_v19, 3 }
 0x1cb   : > { %v793_v32 = vperm.slane %v769_v19, 4  ;;  %v799_v37 = vperm.slane %v769_v19, 5  ;;  %v805_v42 = vperm.slane %v769_v19, 6  ;;  %v811_v47 = vperm.slane %v769_v19, 7 }
 0x1cc   : > { %v772_v28 = vmul.f32 %v771_v22, %v770_v20  ;;  %v773_v29 = vmul.f32 %v771_v22, %v1398_v2  ;;  %v776_v30 = vmul.f32 %v775_v23, %v774_v21  ;;  %v778_v31 = vmul.f32 %v775_v23, %v1410_v6 }
 0x1cd   : > { %v782_v34 = vmul.f32 %v781_v25, %v780_v26  ;;  %v784_v35 = vmul.f32 %v781_v25, %v1415_v7  ;;  %v788_v40 = vmul.f32 %v787_v27, %v786_v52  ;;  %v790_v2 = vmul.f32 %v787_v27, %v1418_v8  ;;  %v810_v8 = vld [vmem:[%s1386_s26 + $0x1c] sm:$0xf]  ;;  %s820_s26 = scalar_lea.sflag [#allocation4], %s1374_s18 }
 0x1ce   : > { %v777_v48 = vadd.f32 %v776_v30, %v772_v28  ;;  %v779_v33 = vadd.f32 %v778_v31, %v773_v29  ;;  %v794_v44 = vmul.f32 %v793_v32, %v792_v36  ;;  %v796_v45 = vmul.f32 %v793_v32, %v1423_v9 }
 0x1cf   : > { %v800_v50 = vmul.f32 %v799_v37, %v798_v41  ;;  %v802_v51 = vmul.f32 %v799_v37, %v1468_v24  ;;  %v806_v54 = vmul.f32 %v805_v42, %v804_v46  ;;  %v808_v9 = vmul.f32 %v805_v42, %v1426_v10 }
 0x1d0   : > { %v783_v38 = vadd.f32 %v782_v34, %v777_v48  ;;  %v785_v39 = vadd.f32 %v784_v35, %v779_v33  ;;  %v812_v57 = vmul.f32 %v811_v47, %v810_v8  ;;  %v814_v24 = vmul.f32 %v811_v47, %v1430_v11 }
 0x1d2   : > { %v789_v6 = vadd.f32 %v788_v40, %v783_v38  ;;  %v791_v43 = vadd.f32 %v790_v2, %v785_v39 }
 0x1d4   : > { %v795_v7 = vadd.f32 %v794_v44, %v789_v6  ;;  %v797_v49 = vadd.f32 %v796_v45, %v791_v43 }
 0x1d6   : > { %v801_v16 = vadd.f32 %v800_v50, %v795_v7  ;;  %v803_v53 = vadd.f32 %v802_v51, %v797_v49 }
 0x1d8   : > { %v807_v55 = vadd.f32 %v806_v54, %v801_v16  ;;  %v809_v56 = vadd.f32 %v808_v9, %v803_v53 }
 0x1da   : > { %v813_v58 = vadd.f32 %v812_v57, %v807_v55  ;;  %v815_v59 = vadd.f32 %v814_v24, %v809_v56 }
 0x1dc   : > { %817 = vst [vmem:[%s1517_s15 + $0x8] sm:$0xff] %v815_v59 }
 0x1dd   : > { %818 = vst [vmem:[%s1517_s15 + $0x10] sm:$0xf] %v813_v58 }
 0x1de   : > { %1168 = shalt.err (!%p1165_p0)
}
 0x1df   : > { %s1217_s18 = smov 128   ;;  %s1218_s22 = smov 256  }
 0x1e0   : > { %s1219_s23 = smov 8  }
 0x1e1   : > { %985 = dma.vmem_to_hbm [thread:$0]  (%p1310_p11), %s832_s28, 384, %s834_s29, %s820_s26, %s1217_s18, %s1218_s22, %s1219_s23  }
 0x1e2 PF: > { %s848_s15 = sand.u32 1, %s1199_s24   ;;  %p995_p8 = pnand %p944_p9, %p1314_p12 }
 0x1e3   : > { %s849_s11 = scalar_lea.sflag [#allocation4], %s848_s15 }
 0x1e4   : > { %p996_p10 = pneg %p995_p8 }
 0x1e6   : > { %1194 = dma.done.wait (%p996_p10), %s849_s11, 384  }
 0x1e7   : > { %1196 = vsyncadd (%p996_p10), %s849_s11, 4294966912  ;;  %s1589_s16 = sld [smem:[#allocation11_spill]]  ;;  %p23_p1 = scmp.ge.s32.totalorder %s1285_s30, 4  }
 0x1e8   : > { %s1590_s26 = sld [smem:[#allocation12_spill]]  ;;  %s1591_s24 = smov %s1203_s25 }
 0x1e9   : > { %s1593_s27 = smov %s1285_s30  ;;  %25 = sbr.rel (!%p23_p1) target bundleno = 9 (0x9), region = 109 }
 0x1ed   : > { %s1592_s25 = smov %s1589_s16 }
 0x1ee   :  { %855 = vsyncpa [#allocation3], 1 }
 0x1ef   :  { %857 = vsyncpa [#allocation3 + $0x1], 1 }
 0x1f0   :  { %858 = vsyncpa [#allocation6], 1 }
 0x1f1   :  { %860 = vsyncpa [#allocation6 + $0x1], 1 }
 0x1f2   :  { %861 = vsyncpa [#allocation4], 1 }
 0x1f3   :  { %863 = vsyncpa [#allocation4 + $0x1], 1 }

</bundles_post_ra>
